<compile_context>
chip_gen: v7x
topology: tpu7x:2x2x1
jax: 0.10.0
libtpu: 0.0.40
codegen_flags: <defaults>
</compile_context>

<pallas_src>
import functools

import jax
import jax.numpy as jnp
from jax.experimental import pallas as pl
from jax.experimental.pallas import tpu as pltpu


def _round_up(v, m):
    return (v + m - 1) // m * m


def _dot_orders(f_p, h_p, o_p):
    """Static matmul-order choices: make the N^2 adjacency matmul touch the
    smaller feature width of each layer."""
    adj_first_conv1 = f_p <= h_p      # (Â @ X) @ W1   vs   Â @ (X @ W1)
    weight_first_conv2 = o_p <= h_p   # Â @ (h @ W2)   vs   (Â @ h) @ W2
    return adj_first_conv1, weight_first_conv2


def _gcn_kernel(adj_ref, x_ref, w1_ref, b1_ref, g1_ref, be1_ref,
                w2_ref, b2_ref, out_ref, *,
                hidden_real, adj_first_conv1, weight_first_conv2):
    G, N, _ = adj_ref.shape
    Fp = x_ref.shape[-1]
    Hp = w1_ref.shape[-1]
    Op = w2_ref.shape[-1]

    adj = adj_ref[...]                      # [G, N, N]   bf16
    x = x_ref[...]                          # [G, N, Fp]  bf16

    # ---- GCNConv1 (order chosen statically) --------------------------------
    if adj_first_conv1:
        ax = jnp.einsum('gij,gjf->gif', adj, x,
                        preferred_element_type=jnp.float32)            # [G,N,Fp]
        h = jnp.dot(ax.reshape(G * N, Fp).astype(jnp.bfloat16), w1_ref[...],
                    preferred_element_type=jnp.float32)                # [G*N,Hp]
    else:
        xw = jnp.dot(x.reshape(G * N, Fp), w1_ref[...],
                     preferred_element_type=jnp.float32)
        h = jnp.einsum('gij,gjh->gih', adj,
                       xw.reshape(G, N, Hp).astype(jnp.bfloat16),
                       preferred_element_type=jnp.float32).reshape(G * N, Hp)
    h = jnp.maximum(h + b1_ref[...], 0.0)

    # ---- LayerNorm (fused single-pass stats; padded columns are exact 0) ----
    inv_h = 1.0 / hidden_real
    mu = jnp.sum(h, axis=-1, keepdims=True) * inv_h
    var = jnp.sum(h * h, axis=-1, keepdims=True) * inv_h - mu * mu
    h = (h - mu) * jax.lax.rsqrt(var + 1e-5)
    h = h * g1_ref[...] + be1_ref[...]
    hb = h.astype(jnp.bfloat16)

    # ---- GCNConv2 -----------------------------------------------------------
    if weight_first_conv2:
        hw = jnp.dot(hb, w2_ref[...], preferred_element_type=jnp.float32)
        out = jnp.einsum('gij,gjo->gio', adj,
                         hw.reshape(G, N, Op).astype(jnp.bfloat16),
                         preferred_element_type=jnp.float32).reshape(G * N, Op)
    else:
        ah = jnp.einsum('gij,gjh->gih', adj, hb.reshape(G, N, Hp),
                        preferred_element_type=jnp.float32)
        out = jnp.dot(ah.reshape(G * N, Hp).astype(jnp.bfloat16), w2_ref[...],
                      preferred_element_type=jnp.float32)
    out = out + b2_ref[...]
    out_ref[...] = out.reshape(G, N, Op).astype(out_ref.dtype)


def gcn_model_forward(adj, x, params, *, graphs_per_step=None):
    """adj: [B, N, N] normalized adjacency; x: [B, N, F_in] node features."""
    B, N, F_in = x.shape
    H = params["w1"].shape[1]
    O = params["w2"].shape[1]

    N_p = _round_up(N, 8)
    F_p = _round_up(F_in, 128)
    H_p = _round_up(H, 128)
    O_p = _round_up(O, 128)

    if graphs_per_step is None:
        # largest divisor of B whose G*N_p row slab is ~one MXU M tile
        target = max(1, 256 // N_p)
        G = max(d for d in range(1, B + 1) if B % d == 0 and d <= target)
    else:
        G = graphs_per_step
    assert B % G == 0, "graphs_per_step must divide the number of graphs"

    f32, bf16 = jnp.float32, jnp.bfloat16
    adj_p = jnp.zeros((B, N_p, N_p), bf16).at[:, :N, :N].set(adj.astype(bf16))
    x_p = jnp.zeros((B, N_p, F_p), bf16).at[:, :N, :F_in].set(x.astype(bf16))
    w1_p = jnp.zeros((F_p, H_p), bf16).at[:F_in, :H].set(params["w1"].astype(bf16))
    w2_p = jnp.zeros((H_p, O_p), bf16).at[:H, :O].set(params["w2"].astype(bf16))
    b1_p = jnp.zeros((1, H_p), f32).at[:, :H].set(params["b1"].reshape(1, H))
    g1_p = jnp.zeros((1, H_p), f32).at[:, :H].set(params["gamma1"].reshape(1, H))
    be1_p = jnp.zeros((1, H_p), f32).at[:, :H].set(params["beta1"].reshape(1, H))
    b2_p = jnp.zeros((1, O_p), f32).at[:, :O].set(params["b2"].reshape(1, O))

    adj_first_conv1, weight_first_conv2 = _dot_orders(F_p, H_p, O_p)
    kernel = functools.partial(
        _gcn_kernel, hidden_real=float(H),
        adj_first_conv1=adj_first_conv1, weight_first_conv2=weight_first_conv2)

    per_group = lambda shape: pl.BlockSpec((G,) + shape, lambda b: (b, 0, 0))
    shared = lambda shape: pl.BlockSpec(shape, lambda b: (0,) * len(shape))

    # Rough per-step VMEM need (double-buffered blocks + f32 intermediates);
    # only raise the scoped-VMEM cap (16/32/32 MiB default on v5e/v6e/v7x)
    # when actually needed.
    step_bytes = (2 * (G * N_p * N_p * 2 + G * N_p * F_p * 2 + G * N_p * O_p * 4
                       + (F_p * H_p + H_p * O_p) * 2 + 4 * (H_p + O_p) * 4)
                  + 3 * G * N_p * H_p * 4)
    cp = dict(dimension_semantics=("parallel",))
    if step_bytes > 24 * 1024 * 1024:
        cp["vmem_limit_bytes"] = min(int(1.5 * step_bytes), 100 * 1024 * 1024)
    # TODO(synk): for large N the (G, N_p, N_p) adjacency block no longer fits
    # VMEM (esp. v7x, 64 MiB physical); add a row-tile grid axis over N there.

    out_p = pl.pallas_call(
        kernel,
        out_shape=jax.ShapeDtypeStruct((B, N_p, O_p), jnp.float32),
        grid_spec=pltpu.PrefetchScalarGridSpec(
            num_scalar_prefetch=0,
            grid=(B // G,),
            in_specs=[
                per_group((N_p, N_p)),   # adj
                per_group((N_p, F_p)),   # x
                shared((F_p, H_p)),      # w1
                shared((1, H_p)),        # b1
                shared((1, H_p)),        # gamma1
                shared((1, H_p)),        # beta1
                shared((H_p, O_p)),      # w2
                shared((1, O_p)),        # b2
            ],
            out_specs=per_group((N_p, O_p)),
        ),
        compiler_params=pltpu.CompilerParams(**cp),
    )(adj_p, x_p, w1_p, b1_p, g1_p, be1_p, w2_p, b2_p)

    return out_p[:, :N, :O]


def gcn_reference(adj, x, params):
    """Pure-JAX reference mirroring the kernel's bf16-input / f32-accumulate
    math (same cast points and matmul order), for the numerical check."""
    H = params["w1"].shape[1]
    F_p = _round_up(x.shape[-1], 128)
    H_p = _round_up(H, 128)
    O_p = _round_up(params["w2"].shape[1], 128)
    adj_first_conv1, weight_first_conv2 = _dot_orders(F_p, H_p, O_p)

    bf16, f32 = jnp.bfloat16, jnp.float32
    a = adj.astype(bf16)
    xb = x.astype(bf16)
    w1 = params["w1"].astype(bf16)
    w2 = params["w2"].astype(bf16)

    if adj_first_conv1:
        ax = jnp.einsum('bij,bjf->bif', a, xb, preferred_element_type=f32)
        h = jnp.einsum('bnf,fh->bnh', ax.astype(bf16), w1,
                       preferred_element_type=f32)
    else:
        xw = jnp.einsum('bnf,fh->bnh', xb, w1, preferred_element_type=f32)
        h = jnp.einsum('bij,bjh->bih', a, xw.astype(bf16),
                       preferred_element_type=f32)
    h = jnp.maximum(h + params["b1"], 0.0)

    mu = jnp.mean(h, axis=-1, keepdims=True)
    var = jnp.mean(h * h, axis=-1, keepdims=True) - mu * mu
    h = (h - mu) * jax.lax.rsqrt(var + 1e-5)
    h = h * params["gamma1"] + params["beta1"]
    hb = h.astype(bf16)

    if weight_first_conv2:
        hw = jnp.einsum('bnh,ho->bno', hb, w2, preferred_element_type=f32)
        out = jnp.einsum('bij,bjo->bio', a, hw.astype(bf16),
                         preferred_element_type=f32)
    else:
        ah = jnp.einsum('bij,bjh->bih', a, hb, preferred_element_type=f32)
        out = jnp.einsum('bnh,ho->bno', ah.astype(bf16), w2,
                         preferred_element_type=f32)
    return out + params["b2"]


def build_normalized_adj(edge_index, num_nodes):
    """Dense Â = D^{-1/2} (A + I) D^{-1/2} matching torch_geometric gcn_norm:
    duplicate edges scatter-add; every node ends up with exactly one weight-1
    self-loop (as in add_remaining_self_loops with unit edge weights)."""
    src, dst = edge_index[0], edge_index[1]
    w = jnp.where(src != dst, 1.0, 0.0).astype(jnp.float32)
    adj = jnp.zeros((num_nodes, num_nodes), jnp.float32)
    adj = adj.at[dst, src].add(w)                 # message flows src -> dst
    adj = adj + jnp.eye(num_nodes, dtype=jnp.float32)
    deg = jnp.sum(adj, axis=1)                    # degree at aggregation node
    dinv = jax.lax.rsqrt(jnp.maximum(deg, 1e-12))
    return adj * dinv[:, None] * dinv[None, :]


def init_params(key, input_dim, hidden_dim, output_dim):
    k1, k2 = jax.random.split(key)
    glorot = lambda k, fan_in, fan_out: jax.random.uniform(
        k, (fan_in, fan_out), jnp.float32,
        -jnp.sqrt(6.0 / (fan_in + fan_out)), jnp.sqrt(6.0 / (fan_in + fan_out)))
    return {
        "w1": glorot(k1, input_dim, hidden_dim),
        "b1": jnp.zeros((1, hidden_dim), jnp.float32),
        "gamma1": jnp.ones((1, hidden_dim), jnp.float32),
        "beta1": jnp.zeros((1, hidden_dim), jnp.float32),
        "w2": glorot(k2, hidden_dim, output_dim),
        "b2": jnp.zeros((1, output_dim), jnp.float32),
    }


if __name__ == "__main__":
    B, N = 2, 16             # 2 graphs in the list, 16 nodes each
    input_dim, hidden_dim, output_dim = 8, 32, 16
    E = 40                   # edges per graph

    key = jax.random.PRNGKey(0)
    kx, ke, kp = jax.random.split(key, 3)

    # x_list -> [B, N, input_dim]
    x = jax.random.normal(kx, (B, N, input_dim), jnp.float32)
    # edge_index_list -> [B, 2, E], converted to normalized dense adjacency
    edge_index = jax.random.randint(ke, (B, 2, E), 0, N, jnp.int32)
    adj = jnp.stack([build_normalized_adj(edge_index[b], N) for b in range(B)])
    params = init_params(kp, input_dim, hidden_dim, output_dim)

    out = gcn_model_forward(adj, x, params)
    jax.block_until_ready(out)
    assert out.shape == (B, N, output_dim)
    assert bool(jnp.all(jnp.isfinite(out)))

    ref = gcn_reference(adj, x, params)
    err = float(jnp.max(jnp.abs(out - ref)))
    assert err < 2e-2, f"max abs error vs reference: {err}"
    print("KERNEL_OK")
</pallas_src>

<mosaic_0001>
module attributes {stable_mosaic.version = 11 : i64} {
  func.func @_gcn_kernel(%arg0: i32, %arg1: memref<2x16x16xbf16, #tpu.memory_space<vmem>>, %arg2: memref<2x16x128xbf16, #tpu.memory_space<vmem>>, %arg3: memref<128x128xbf16, #tpu.memory_space<vmem>>, %arg4: memref<1x128xf32, #tpu.memory_space<vmem>>, %arg5: memref<1x128xf32, #tpu.memory_space<vmem>>, %arg6: memref<1x128xf32, #tpu.memory_space<vmem>>, %arg7: memref<128x128xbf16, #tpu.memory_space<vmem>>, %arg8: memref<1x128xf32, #tpu.memory_space<vmem>>, %arg9: memref<2x16x128xf32, #tpu.memory_space<vmem>>) attributes {dimension_semantics = [#tpu.dimension_semantics<parallel>], iteration_bounds = array<i64: 1>, scalar_prefetch = 0 : i64, scratch_operands = 0 : i64, tpu.core_type = #tpu.core_type<tc>, window_params = [{transform_indices = @transform_0, window_bounds = array<i64: 2, 16, 16>}, {transform_indices = @transform_1, window_bounds = array<i64: 2, 16, 128>}, {pipeline_mode = #tpu.pipeline_mode<synchronous>, transform_indices = @transform_2, window_bounds = array<i64: 128, 128>}, {pipeline_mode = #tpu.pipeline_mode<synchronous>, transform_indices = @transform_3, window_bounds = array<i64: 1, 128>}, {pipeline_mode = #tpu.pipeline_mode<synchronous>, transform_indices = @transform_4, window_bounds = array<i64: 1, 128>}, {pipeline_mode = #tpu.pipeline_mode<synchronous>, transform_indices = @transform_5, window_bounds = array<i64: 1, 128>}, {pipeline_mode = #tpu.pipeline_mode<synchronous>, transform_indices = @transform_6, window_bounds = array<i64: 128, 128>}, {pipeline_mode = #tpu.pipeline_mode<synchronous>, transform_indices = @transform_7, window_bounds = array<i64: 1, 128>}, {transform_indices = @transform_8, window_bounds = array<i64: 2, 16, 128>}]} {
    %c0 = arith.constant 0 : index
    %c0_0 = arith.constant 0 : index
    %c0_1 = arith.constant 0 : index
    %0 = vector.load %arg1[%c0, %c0_0, %c0_1] : memref<2x16x16xbf16, #tpu.memory_space<vmem>>, vector<2x16x16xbf16>
    %c0_2 = arith.constant 0 : index
    %c0_3 = arith.constant 0 : index
    %c0_4 = arith.constant 0 : index
    %1 = vector.load %arg2[%c0_2, %c0_3, %c0_4] : memref<2x16x128xbf16, #tpu.memory_space<vmem>>, vector<2x16x128xbf16>
    "tpu.trace_start"() <{level = 10 : i32, message = "gij,gjf->gif"}> : () -> ()
    %cst = arith.constant dense<0.000000e+00> : vector<2x16x128xf32>
    %2 = tpu.matmul %0, %1, %cst {dimension_numbers = #tpu.dot_dimension_numbers<[2], [1], [1], [2], [0, 0, 0, 1, 1, 2], [0], [0]>} : vector<2x16x16xbf16>, vector<2x16x128xbf16>, vector<2x16x128xf32> -> vector<2x16x128xf32>
    "tpu.trace_stop"() : () -> ()
    %3 = vector.shape_cast %2 : vector<2x16x128xf32> to vector<32x128xf32>
    %4 = arith.truncf %3 : vector<32x128xf32> to vector<32x128xbf16>
    %c0_5 = arith.constant 0 : index
    %c0_6 = arith.constant 0 : index
    %5 = vector.load %arg3[%c0_5, %c0_6] : memref<128x128xbf16, #tpu.memory_space<vmem>>, vector<128x128xbf16>
    %cst_7 = arith.constant dense<0.000000e+00> : vector<32x128xf32>
    %6 = tpu.matmul %4, %5, %cst_7 {dimension_numbers = #tpu.dot_dimension_numbers<[1], [0], [0], [1], [0, 0, 1, 1], [], []>} : vector<32x128xbf16>, vector<128x128xbf16>, vector<32x128xf32> -> vector<32x128xf32>
    %c0_8 = arith.constant 0 : index
    %c0_9 = arith.constant 0 : index
    %7 = vector.load %arg4[%c0_8, %c0_9] : memref<1x128xf32, #tpu.memory_space<vmem>>, vector<1x128xf32>
    %8 = vector.broadcast %7 : vector<1x128xf32> to vector<32x128xf32>
    %9 = arith.addf %6, %8 : vector<32x128xf32>
    %cst_10 = arith.constant 0.000000e+00 : f32
    %10 = vector.broadcast %cst_10 : f32 to vector<32x128xf32>
    %11 = arith.maximumf %9, %10 : vector<32x128xf32>
    %cst_11 = arith.constant dense<0.000000e+00> : vector<32xf32>
    %12 = vector.multi_reduction <add>, %11, %cst_11 [1] : vector<32x128xf32> to vector<32xf32>
    %13 = vector.shape_cast %12 : vector<32xf32> to vector<32x1xf32>
    %cst_12 = arith.constant 3.125000e-02 : f32
    %14 = vector.broadcast %cst_12 : f32 to vector<32x1xf32>
    %15 = arith.mulf %13, %14 : vector<32x1xf32>
    %16 = arith.mulf %11, %11 : vector<32x128xf32>
    %cst_13 = arith.constant dense<0.000000e+00> : vector<32xf32>
    %17 = vector.multi_reduction <add>, %16, %cst_13 [1] : vector<32x128xf32> to vector<32xf32>
    %18 = vector.shape_cast %17 : vector<32xf32> to vector<32x1xf32>
    %cst_14 = arith.constant 3.125000e-02 : f32
    %19 = vector.broadcast %cst_14 : f32 to vector<32x1xf32>
    %20 = arith.mulf %18, %19 : vector<32x1xf32>
    %21 = arith.mulf %15, %15 : vector<32x1xf32>
    %22 = arith.subf %20, %21 : vector<32x1xf32>
    %23 = vector.broadcast %15 : vector<32x1xf32> to vector<32x128xf32>
    %24 = arith.subf %11, %23 : vector<32x128xf32>
    %cst_15 = arith.constant 9.99999974E-6 : f32
    %25 = vector.broadcast %cst_15 : f32 to vector<32x1xf32>
    %26 = arith.addf %22, %25 : vector<32x1xf32>
    %27 = math.rsqrt %26 : vector<32x1xf32>
    %28 = vector.broadcast %27 : vector<32x1xf32> to vector<32x128xf32>
    %29 = arith.mulf %24, %28 : vector<32x128xf32>
    %c0_16 = arith.constant 0 : index
    %c0_17 = arith.constant 0 : index
    %30 = vector.load %arg5[%c0_16, %c0_17] : memref<1x128xf32, #tpu.memory_space<vmem>>, vector<1x128xf32>
    %31 = vector.broadcast %30 : vector<1x128xf32> to vector<32x128xf32>
    %32 = arith.mulf %29, %31 : vector<32x128xf32>
    %c0_18 = arith.constant 0 : index
    %c0_19 = arith.constant 0 : index
    %33 = vector.load %arg6[%c0_18, %c0_19] : memref<1x128xf32, #tpu.memory_space<vmem>>, vector<1x128xf32>
    %34 = vector.broadcast %33 : vector<1x128xf32> to vector<32x128xf32>
    %35 = arith.addf %32, %34 : vector<32x128xf32>
    %36 = arith.truncf %35 : vector<32x128xf32> to vector<32x128xbf16>
    %c0_20 = arith.constant 0 : index
    %c0_21 = arith.constant 0 : index
    %37 = vector.load %arg7[%c0_20, %c0_21] : memref<128x128xbf16, #tpu.memory_space<vmem>>, vector<128x128xbf16>
    %cst_22 = arith.constant dense<0.000000e+00> : vector<32x128xf32>
    %38 = tpu.matmul %36, %37, %cst_22 {dimension_numbers = #tpu.dot_dimension_numbers<[1], [0], [0], [1], [0, 0, 1, 1], [], []>} : vector<32x128xbf16>, vector<128x128xbf16>, vector<32x128xf32> -> vector<32x128xf32>
    %39 = vector.shape_cast %38 : vector<32x128xf32> to vector<2x16x128xf32>
    %40 = arith.truncf %39 : vector<2x16x128xf32> to vector<2x16x128xbf16>
    "tpu.trace_start"() <{level = 10 : i32, message = "gij,gjo->gio"}> : () -> ()
    %cst_23 = arith.constant dense<0.000000e+00> : vector<2x16x128xf32>
    %41 = tpu.matmul %0, %40, %cst_23 {dimension_numbers = #tpu.dot_dimension_numbers<[2], [1], [1], [2], [0, 0, 0, 1, 1, 2], [0], [0]>} : vector<2x16x16xbf16>, vector<2x16x128xbf16>, vector<2x16x128xf32> -> vector<2x16x128xf32>
    "tpu.trace_stop"() : () -> ()
    %42 = vector.shape_cast %41 : vector<2x16x128xf32> to vector<32x128xf32>
    %c0_24 = arith.constant 0 : index
    %c0_25 = arith.constant 0 : index
    %43 = vector.load %arg8[%c0_24, %c0_25] : memref<1x128xf32, #tpu.memory_space<vmem>>, vector<1x128xf32>
    %44 = vector.broadcast %43 : vector<1x128xf32> to vector<32x128xf32>
    %45 = arith.addf %42, %44 : vector<32x128xf32>
    %46 = vector.shape_cast %45 : vector<32x128xf32> to vector<2x16x128xf32>
    %c0_26 = arith.constant 0 : index
    %c0_27 = arith.constant 0 : index
    %c0_28 = arith.constant 0 : index
    %47 = vector.load %arg9[%c0_26, %c0_27, %c0_28] : memref<2x16x128xf32, #tpu.memory_space<vmem>>, vector<2x16x128xf32>
    tpu.vector_store %arg9[%c0_26, %c0_27, %c0_28], %46 {strides = array<i32>} : memref<2x16x128xf32, #tpu.memory_space<vmem>>, vector<2x16x128xf32>,
    return
  }
  func.func @transform_0(%arg0: i32) -> (i32, i32, i32) {
    %c0_i32 = arith.constant 0 : i32
    %c0_i32_0 = arith.constant 0 : i32
    %c0_i32_1 = arith.constant 0 : i32
    return %arg0, %c0_i32, %c0_i32_0 : i32, i32, i32
  }
  func.func @transform_1(%arg0: i32) -> (i32, i32, i32) {
    %c0_i32 = arith.constant 0 : i32
    %c0_i32_0 = arith.constant 0 : i32
    %c0_i32_1 = arith.constant 0 : i32
    return %arg0, %c0_i32, %c0_i32_0 : i32, i32, i32
  }
  func.func @transform_2(%arg0: i32) -> (i32, i32) {
    %c0_i32 = arith.constant 0 : i32
    %c0_i32_0 = arith.constant 0 : i32
    %c0_i32_1 = arith.constant 0 : i32
    return %c0_i32, %c0_i32_0 : i32, i32
  }
  func.func @transform_3(%arg0: i32) -> (i32, i32) {
    %c0_i32 = arith.constant 0 : i32
    %c0_i32_0 = arith.constant 0 : i32
    %c0_i32_1 = arith.constant 0 : i32
    return %c0_i32, %c0_i32_0 : i32, i32
  }
  func.func @transform_4(%arg0: i32) -> (i32, i32) {
    %c0_i32 = arith.constant 0 : i32
    %c0_i32_0 = arith.constant 0 : i32
    %c0_i32_1 = arith.constant 0 : i32
    return %c0_i32, %c0_i32_0 : i32, i32
  }
  func.func @transform_5(%arg0: i32) -> (i32, i32) {
    %c0_i32 = arith.constant 0 : i32
    %c0_i32_0 = arith.constant 0 : i32
    %c0_i32_1 = arith.constant 0 : i32
    return %c0_i32, %c0_i32_0 : i32, i32
  }
  func.func @transform_6(%arg0: i32) -> (i32, i32) {
    %c0_i32 = arith.constant 0 : i32
    %c0_i32_0 = arith.constant 0 : i32
    %c0_i32_1 = arith.constant 0 : i32
    return %c0_i32, %c0_i32_0 : i32, i32
  }
  func.func @transform_7(%arg0: i32) -> (i32, i32) {
    %c0_i32 = arith.constant 0 : i32
    %c0_i32_0 = arith.constant 0 : i32
    %c0_i32_1 = arith.constant 0 : i32
    return %c0_i32, %c0_i32_0 : i32, i32
  }
  func.func @transform_8(%arg0: i32) -> (i32, i32, i32) {
    %c0_i32 = arith.constant 0 : i32
    %c0_i32_0 = arith.constant 0 : i32
    %c0_i32_1 = arith.constant 0 : i32
    return %arg0, %c0_i32, %c0_i32_0 : i32, i32, i32
  }
}

</mosaic_0001>

<bundles_post_ra>
// kernel: tpu_custom_call.1
= control target key start
LH: loop header
LB: loop body
LE: loop exit
PB: predicated region body
PF: predicated region fallthrough
CT: control target
= control target key end

     0   :  { %13 = vsyncpa [#allocation3], 0  ;;  %s1117_s0 = inlined_call_operand.hbm [shape: bf16[2,16,16], index: 0, kind: input, shape index: {}]   ;;  %s1118_s1 = inlined_call_operand.hbm [shape: bf16[2,16,128], index: 1, kind: input, shape index: {}]   ;;  %s1119_s2 = inlined_call_operand.hbm [shape: bf16[128,128], index: 2, kind: input, shape index: {}]   ;;  %s1120_s3 = inlined_call_operand.vmem [shape: f32[1,128], index: 3, kind: input, shape index: {}]   ;;  %s1121_s4 = inlined_call_operand.vmem [shape: f32[1,128], index: 4, kind: input, shape index: {}]   ;;  %s1122_s5 = inlined_call_operand.vmem [shape: f32[1,128], index: 5, kind: input, shape index: {}]   ;;  %s1123_s6 = inlined_call_operand.hbm [shape: bf16[128,128], index: 6, kind: input, shape index: {}]   ;;  %s1124_s7 = inlined_call_operand.vmem [shape: f32[1,128], index: 7, kind: input, shape index: {}]   ;;  %s1125_s8 = inlined_call_operand.hbm [shape: f32[2,16,128], index: 8, kind: output, shape index: {}]  }
   0x1   :  { %14 = vsyncpa [#allocation6], 0 }
   0x2   :  { %15 = vsyncpa [#allocation9], 0 }
   0x3   :  { %16 = vsyncpa [#allocation4], 0  ;;  %s915_s27 = smov [#allocation5]   ;;  %s916_s29 = smov [#allocation2]  }
   0x4   :  { %s34_s28 = sshll.u32 %s915_s27, 4  ;;  %s22_s30 = sshll.u32 %s916_s29, 4  ;;  %s35_s28 = int_to_ptr.vmem [resolvable:$true] %s34_s28  ;;  %s971_s30 = int_to_ptr.vmem [resolvable:$true] %s22_s30 }
   0x5   :  { %s797_s11 = scalar_lea.hbm %s1118_s1, 256 }
   0x6   :  { %p798_p0 = scmp.ne.s32.totalorder %s1118_s1, %s797_s11  ;;  %p801_p1 = scmp.lt.u32.totalorder %s797_s11, %s1118_s1 }
   0x8   :  { %p803_p2 = pnand %p801_p1, %p798_p0 }
   0xa   :  { %806 = shalt.err (!%p803_p2)
}
   0xb   :  { %s807_s16 = scalar_lea.vmem %s35_s28, 256  ;;  %p812_p4 = scmp.lt.s32.totalorder %s35_s28, %s35_s28 }
   0xc   :  { %p808_p3 = scmp.ne.s32.totalorder %s35_s28, %s807_s16  ;;  %p813_p5 = scmp.lt.s32.totalorder %s807_s16, %s807_s16 }
   0xe   :  { %p814_p6 = por %p813_p5, %p812_p4 }
  0x10   :  { %p815_p7 = pnand %p814_p6, %p808_p3 }
  0x12   :  { %818 = shalt.err (!%p815_p7)
}
  0x13   :  { %s917_s17 = smov 64   ;;  %s918_s18 = smov 4  }
  0x14   :  { %40 = dma.hbm_to_vmem [thread:$0]  %s1118_s1, 256, %s35_s28, [#allocation6], %s917_s17, %s917_s17, %s918_s18  }
  0x15   :  { %s819_s23 = scalar_lea.hbm %s1117_s0, 256 }
  0x16   :  { %p820_p8 = scmp.ne.s32.totalorder %s1117_s0, %s819_s23  ;;  %p823_p9 = scmp.lt.u32.totalorder %s819_s23, %s1117_s0 }
  0x18   :  { %p825_p10 = pnand %p823_p9, %p820_p8 }
  0x1a   :  { %828 = shalt.err (!%p825_p10)
}
  0x1b   :  { %s829_s29 = scalar_lea.vmem %s971_s30, 256  ;;  %p834_p12 = scmp.lt.s32.totalorder %s971_s30, %s971_s30 }
  0x1c   :  { %p830_p11 = scmp.ne.s32.totalorder %s971_s30, %s829_s29  ;;  %p835_p13 = scmp.lt.s32.totalorder %s829_s29, %s829_s29 }
  0x1e   :  { %p836_p0 = por %p835_p13, %p834_p12 }
  0x20   :  { %p837_p1 = pnand %p836_p0, %p830_p11 }
  0x22   :  { %840 = shalt.err (!%p837_p1)
}
  0x23   :  { %28 = dma.hbm_to_vmem [thread:$0]  %s1117_s0, 256, %s971_s30, [#allocation3], %s917_s17, %s917_s17, %s918_s18  }
  0x24   :  { %s919_s9 = smov [#allocation7]   ;;  %s920_s11 = smov [#allocation8]  }
  0x25   :  { %s46_s10 = sshll.u32 %s919_s9, 4  ;;  %s64_s12 = sshll.u32 %s920_s11, 4  ;;  %s47_s10 = int_to_ptr.vmem [resolvable:$true] %s46_s10  ;;  %s1008_s12 = int_to_ptr.vmem [resolvable:$true] %s64_s12 }
  0x26   :  { %s841_s15 = scalar_lea.hbm %s1119_s2, 1024 }
  0x27   :  { %p842_p2 = scmp.ne.s32.totalorder %s1119_s2, %s841_s15  ;;  %p845_p3 = scmp.lt.u32.totalorder %s841_s15, %s1119_s2 }
  0x29   :  { %p847_p4 = pnand %p845_p3, %p842_p2 }
  0x2b   :  { %850 = shalt.err (!%p847_p4)
}
  0x2c   :  { %s851_s0 = scalar_lea.vmem %s47_s10, 1024  ;;  %p856_p6 = scmp.lt.s32.totalorder %s47_s10, %s47_s10 }
  0x2d   :  { %p852_p5 = scmp.ne.s32.totalorder %s47_s10, %s851_s0  ;;  %p857_p7 = scmp.lt.s32.totalorder %s851_s0, %s851_s0 }
  0x2f   :  { %p858_p8 = por %p857_p7, %p856_p6 }
  0x31   :  { %p859_p9 = pnand %p858_p8, %p852_p5 }
  0x33   :  { %862 = shalt.err (!%p859_p9)
}
  0x34   :  { %52 = dma.hbm_to_vmem [thread:$0]  %s1119_s2, 1024, %s47_s10, [#allocation6], %s917_s17, %s917_s17, %s918_s18  }
  0x35   :  { %s863_s25 = scalar_lea.hbm %s1123_s6, 1024 }
  0x36   :  { %p864_p10 = scmp.ne.s32.totalorder %s1123_s6, %s863_s25  ;;  %p867_p11 = scmp.lt.u32.totalorder %s863_s25, %s1123_s6 }
  0x38   :  { %p869_p12 = pnand %p867_p11, %p864_p10 }
  0x3a   :  { %872 = shalt.err (!%p869_p12)
}
  0x3b   :  { %s873_s28 = scalar_lea.vmem %s1008_s12, 1024  ;;  %p878_p0 = scmp.lt.s32.totalorder %s1008_s12, %s1008_s12 }
  0x3c   :  { %p874_p13 = scmp.ne.s32.totalorder %s1008_s12, %s873_s28  ;;  %p879_p1 = scmp.lt.s32.totalorder %s873_s28, %s873_s28 }
  0x3e   :  { %p880_p2 = por %p879_p1, %p878_p0 }
  0x40   :  { %p881_p3 = pnand %p880_p2, %p874_p13 }
  0x42   :  { %884 = shalt.err (!%p881_p3)
}
  0x43   :  { %70 = dma.hbm_to_vmem [thread:$0]  %s1123_s6, 1024, %s1008_s12, [#allocation9], %s917_s17, %s917_s17, %s918_s18  }
  0x44   :  { %907 = dma.done.wait [#allocation3], 256  }
  0x45   :  { %908 = vsyncadd [#allocation3], 4294967040 }
  0x46   :  { %909 = dma.done.wait [#allocation6], 1280  }
  0x47   :  { %910 = vsyncadd [#allocation6], 4294966016 }
  0x48   :  { %911 = dma.done.wait [#allocation9], 1024  }
  0x49   :  { %912 = vsyncadd [#allocation9], 4294966272  ;;  %v921_v0 = vmov 0.0   ;;  %vm922_vm0 = vmmov 0   ;;  %v769_v1 = vld [vmem:[#allocation5] sm:$0xff]   ;;  %v770_v2 = vld [vmem:[#allocation5 + $0x8] sm:$0xff]  }
  0x4a   :  { %694 = vmatprep.subr.bf16.mxu0 %v921_v0  ;;  %700 = vmatprep.subr.bf16.mxu1 %v921_v0  ;;  %v1051_v3 = vld [vmem:[#allocation2] sm:$0xff]   ;;  %vm105_vm1 = vcmask 130048   ;;  %v1053_v4 = vld [vmem:[#allocation2 + $0x8] sm:$0xff]   ;;  %v775_v7 = vld [vmem:[#allocation7 + $0x10] sm:$0xff]   ;;  %s923_s12 = smov [#allocation10]  }
  0x4b   :  { %696 = vmatprep.mubr.msk.bf16.mxu0 %vm922_vm0, %v921_v0  ;;  %702 = vmatprep.mubr.msk.bf16.mxu1 %vm922_vm0, %v921_v0  ;;  %v773_v5 = vld [vmem:[#allocation7] sm:$0xff]   ;;  %v774_v6 = vld [vmem:[#allocation7 + $0x8] sm:$0xff]   ;;  %v776_v8 = vld [vmem:[#allocation7 + $0x18] sm:$0xff]   ;;  %s624_s13 = sshll.u32 %s923_s12, 4  ;;  %s625_s13 = int_to_ptr.vmem [resolvable:$true] %s624_s13 }
  0x4c   :  { %695 = vmatpush3.bf16.msra.mxu0 %v769_v1  ;;  %701 = vmatpush3.bf16.msra.mxu1 %v770_v2  ;;  %v777_v9 = vld [vmem:[#allocation7 + $0x20] sm:$0xff]   ;;  %v778_v10 = vld [vmem:[#allocation7 + $0x28] sm:$0xff]   ;;  %v779_v11 = vld [vmem:[#allocation7 + $0x30] sm:$0xff]   ;;  %p890_p5 = scmp.lt.s32.totalorder %s625_s13, %s625_s13 }
  0x4d   :  { %706 = vmatprep.subr.bf16.mxu0 %v773_v5  ;;  %v780_v12 = vld [vmem:[#allocation7 + $0x38] sm:$0xff]   ;;  %v644_v23 = vld [vmem:[%s1120_s3] ss:$0 sm:$0xff]  ;;  %v782_v41 = vld [vmem:[#allocation8 + $0x8] sm:$0xff]  }
  0x4e   :  { %v781_v40 = vld [vmem:[#allocation8] sm:$0xff]   ;;  %v783_v42 = vld [vmem:[#allocation8 + $0x10] sm:$0xff]   ;;  %v784_v43 = vld [vmem:[#allocation8 + $0x18] sm:$0xff]  }
  0x4f   :  { %697 = vmatmul.mubr.msk.bf16.vlgmr.msra.gmra.mrb[0].mxu0 %vm105_vm1, %v1051_v3  ;;  %703 = vmatmul.mubr.msk.bf16.vlgmr.msra.gmra.mrb[0].mxu1 %vm105_vm1, %v1053_v4  ;;  %v785_v44 = vld [vmem:[#allocation8 + $0x20] sm:$0xff]   ;;  %v786_v45 = vld [vmem:[#allocation8 + $0x28] sm:$0xff]   ;;  %v787_v46 = vld [vmem:[#allocation8 + $0x30] sm:$0xff]  }
  0x50   :  { %707 = vmatpush3.bf16.msra.mxu0 %v773_v5  ;;  %726 = vmatprep.subr.bf16.mxu1 %v781_v40  ;;  %v788_v47 = vld [vmem:[#allocation8 + $0x38] sm:$0xff]  }
  0x51   :  { %708 = vmatprep.subr.bf16.mxu0 %v774_v6  ;;  %727 = vmatpush3.bf16.msra.mxu1 %v781_v40 }
  0x52   :  { %728 = vmatprep.subr.bf16.mxu1 %v782_v41 }
  0x54   :  { %709 = vmatpush3.bf16.msra.mxu0 %v774_v6 }
  0x55   :  { %710 = vmatprep.subr.bf16.mxu0 %v775_v7  ;;  %729 = vmatpush3.bf16.msra.mxu1 %v782_v41 }
  0x56   :  { %730 = vmatprep.subr.bf16.mxu1 %v783_v42 }
  0x58   :  { %711 = vmatpush3.bf16.msra.mxu0 %v775_v7 }
  0x59   :  { %712 = vmatprep.subr.bf16.mxu0 %v776_v8  ;;  %731 = vmatpush3.bf16.msra.mxu1 %v783_v42 }
  0x5a   :  { %732 = vmatprep.subr.bf16.mxu1 %v784_v43 }
  0x5c   :  { %713 = vmatpush3.bf16.msra.mxu0 %v776_v8 }
  0x5d   :  { %714 = vmatprep.subr.bf16.mxu0 %v777_v9  ;;  %733 = vmatpush3.bf16.msra.mxu1 %v784_v43 }
  0x5e   :  { %734 = vmatprep.subr.bf16.mxu1 %v785_v44 }
  0x60   :  { %715 = vmatpush3.bf16.msra.mxu0 %v777_v9 }
  0x61   :  { %716 = vmatprep.subr.bf16.mxu0 %v778_v10  ;;  %735 = vmatpush3.bf16.msra.mxu1 %v785_v44 }
  0x62   :  { %736 = vmatprep.subr.bf16.mxu1 %v786_v45 }
  0x64   :  { %717 = vmatpush3.bf16.msra.mxu0 %v778_v10 }
  0x65   :  { %718 = vmatprep.subr.bf16.mxu0 %v779_v11  ;;  %737 = vmatpush3.bf16.msra.mxu1 %v786_v45  ;;  %v665_v45 = vld [vmem:[%s1124_s7] ss:$0 sm:$0xff]  ;;  %s885_s7 = scalar_lea.vmem %s625_s13, 512 }
  0x66   :  { %738 = vmatprep.subr.bf16.mxu1 %v787_v46  ;;  %p886_p4 = scmp.ne.s32.totalorder %s625_s13, %s885_s7  ;;  %p891_p6 = scmp.lt.s32.totalorder %s885_s7, %s885_s7 }
  0x68   :  { %719 = vmatpush3.bf16.msra.mxu0 %v779_v11  ;;  %p892_p7 = por %p891_p6, %p890_p5 }
  0x69   :  { %720 = vmatprep.subr.bf16.mxu0 %v780_v12  ;;  %739 = vmatpush3.bf16.msra.mxu1 %v787_v46 }
  0x6a   :  { %740 = vmatprep.subr.bf16.mxu1 %v788_v47  ;;  %p893_p8 = pnand %p892_p7, %p886_p4 }
  0x6c   :  { %721 = vmatpush3.bf16.msra.mxu0 %v780_v12 }
  0x6d   :  { %746 = vmatprep.subr.bf16.mxu0 %v921_v0  ;;  %741 = vmatpush3.bf16.msra.mxu1 %v788_v47 }
  0x6e   :  { %752 = vmatprep.subr.bf16.mxu1 %v921_v0 }
 0x122   :  { %v143_v13 = vpop.f32.mrb[0].mxu0  ;;  %v198_v14 = vpop.f32.mrb[0].mxu1 }
 0x123   :  { %v698_v15 = vpop.f32.mrb[1].mxu0  ;;  %v704_v16 = vpop.f32.mrb[1].mxu1 }
 0x124   :  { %v146_v17 = vpop.f32.mrb[2].mxu0  ;;  %v201_v19 = vpop.f32.mrb[2].mxu1 }
 0x125   :  { %v205_v18 = vpack.c.bf16 %v146_v17, %v143_v13  ;;  %v699_v20 = vpop.f32.mrb[3].mxu0  ;;  %v206_v21 = vpack.c.bf16 %v201_v19, %v198_v14  ;;  %v705_v22 = vpop.f32.mrb[3].mxu1 }
 0x126   :  { %v654_v22 = vld [vmem:[%s1122_s5] ss:$0 sm:$0xff] }
 0x127   :  { %722 = vmatprep.mubr.bf16.mxu0 %v205_v18  ;;  %v653_v18 = vld [vmem:[%s1121_s4] ss:$0 sm:$0xff] }
 0x128   :  { %723 = vmatmul.mubr.bf16.vlgmr.msra.gmra.mrb[4].mxu0 %v206_v21 }
 0x129   :  { %748 = vmatprep.mubr.msk.bf16.mxu0 %vm922_vm0, %v921_v0 }
 0x1fb   :  { %v724_v24 = vpop.f32.mrb[4].mxu0 }
 0x1fc   :  { %v321_v25 = vadd.f32 %v724_v24, %v644_v23  ;;  %v312_v26 = vpop.f32.mrb[5].mxu0 }
 0x1fd   :  { %v313_v27 = vadd.f32 %v644_v23, %v312_v26  ;;  %v725_v28 = vpop.f32.mrb[6].mxu0 }
 0x1fe   :  { %v1065_v29 = vmax.f32 %v321_v25, 0.0  ;;  %v324_v30 = vadd.f32 %v725_v28, %v644_v23  ;;  %v315_v31 = vpop.f32.mrb[7].mxu0 }
 0x1ff   :  { %v1067_v32 = vmax.f32 %v313_v27, 0.0  ;;  %v316_v33 = vadd.f32 %v644_v23, %v315_v31 }
 0x200   :  { %335 = vadd.xlane.f32.xlu1 %v1065_v29  ;;  %v1071_v34 = vmax.f32 %v324_v30, 0.0  ;;  %v345_v39 = vmul.f32 %v1065_v29, %v1065_v29 }
 0x201   :  { %331 = vadd.xlane.f32.xlu0 %v1067_v32  ;;  %v1073_v35 = vmax.f32 %v316_v33, 0.0  ;;  %v343_v37 = vmul.f32 %v1067_v32, %v1067_v32 }
 0x202   :  { %v346_v38 = vmul.f32 %v1071_v34, %v1071_v34 }
 0x203   :  { %v344_v36 = vmul.f32 %v1073_v35, %v1073_v35 }
 0x204   :  { %337 = vadd.xlane.f32.xlu1 %v1071_v34 }
 0x205   :  { %333 = vadd.xlane.f32.xlu0 %v1073_v35 }
 0x208   :  { %349 = vadd.xlane.f32.xlu1 %v344_v36 }
 0x209   :  { %347 = vadd.xlane.f32.xlu0 %v343_v37 }
 0x20c   :  { %353 = vadd.xlane.f32.xlu1 %v346_v38 }
 0x20d   :  { %351 = vadd.xlane.f32.xlu0 %v345_v39 }
 0x28d   :  { %v336_v48 = vpop.xlane.xlu1 %335 }
 0x28e   :  { %v332_v49 = vpop.xlane.xlu0 %331  ;;  %v341_v59 = vmul.f32 0.03125, %v336_v48 }
 0x28f   :  { %v339_v52 = vmul.f32 0.03125, %v332_v49 }
 0x290   :  { %v361_v8 = vmul.f32 %v341_v59, %v341_v59  ;;  %v369_v26 = vsub.f32 %v1065_v29, %v341_v59 }
 0x291   :  { %v338_v50 = vpop.xlane.xlu1 %337  ;;  %v359_v60 = vmul.f32 %v339_v52, %v339_v52  ;;  %v367_v17 = vsub.f32 %v1067_v32, %v339_v52 }
 0x292   :  { %v334_v51 = vpop.xlane.xlu0 %333  ;;  %v342_v56 = vmul.f32 0.03125, %v338_v50 }
 0x293   :  { %v340_v53 = vmul.f32 0.03125, %v334_v51 }
 0x294   :  { %v362_v2 = vmul.f32 %v342_v56, %v342_v56  ;;  %v370_v23 = vsub.f32 %v1071_v34, %v342_v56 }
 0x295   :  { %v360_v54 = vmul.f32 %v340_v53, %v340_v53  ;;  %v350_v55 = vpop.xlane.xlu1 %349  ;;  %v368_v15 = vsub.f32 %v1073_v35, %v340_v53 }
 0x296   :  { %v356_v57 = vmul.f32 0.03125, %v350_v55  ;;  %v348_v58 = vpop.xlane.xlu0 %347 }
 0x297   :  { %v355_v61 = vmul.f32 0.03125, %v348_v58 }
 0x298   :  { %v364_v62 = vsub.f32 %v356_v57, %v360_v54 }
 0x299   :  { %v363_v63 = vsub.f32 %v355_v61, %v359_v60  ;;  %v354_v1 = vpop.xlane.xlu1 %353 }
 0x29a   :  { %v372_v5 = vadd.f32 1e-05, %v364_v62  ;;  %v358_v6 = vmul.f32 0.03125, %v354_v1  ;;  %v352_v7 = vpop.xlane.xlu0 %351 }
 0x29b   :  { %v371_v9 = vadd.f32 1e-05, %v363_v63  ;;  %v357_v10 = vmul.f32 0.03125, %v352_v7 }
 0x29c   :  { %789 = vrsqrt.f32 %v372_v5  ;;  %v366_v11 = vsub.f32 %v358_v6, %v362_v2 }
 0x29d   :  { %791 = vrsqrt.f32 %v371_v9  ;;  %v365_v12 = vsub.f32 %v357_v10, %v361_v8 }
 0x29e   :  { %v374_v13 = vadd.f32 1e-05, %v366_v11 }
 0x29f   :  { %v373_v14 = vadd.f32 1e-05, %v365_v12 }
 0x2a0   :  { %793 = vrsqrt.f32 %v374_v13 }
 0x2a1   :  { %795 = vrsqrt.f32 %v373_v14 }
 0x2a6   :  { %v790_v16 = vpop.eup %789 }
 0x2a7   :  { %v792_v19 = vpop.eup %791  ;;  %v380_v20 = vmul.f32 %v790_v16, %v368_v15 }
 0x2a8   :  { %v379_v21 = vmul.f32 %v792_v19, %v367_v17 }
 0x2a9   :  { %v391_v24 = vmul.f32 %v653_v18, %v380_v20 }
 0x2aa   :  { %v794_v25 = vpop.eup %793  ;;  %v390_v27 = vmul.f32 %v653_v18, %v379_v21 }
 0x2ab   :  { %v796_v28 = vpop.eup %795  ;;  %v402_v30 = vadd.f32 %v654_v22, %v391_v24  ;;  %v382_v31 = vmul.f32 %v794_v25, %v370_v23 }
 0x2ac   :  { %v401_v32 = vadd.f32 %v654_v22, %v390_v27  ;;  %v381_v33 = vmul.f32 %v796_v28, %v369_v26 }
 0x2ad   :  { %v393_v35 = vmul.f32 %v653_v18, %v382_v31 }
 0x2ae   :  { %v405_v36 = vpack.c.bf16 %v402_v30, %v401_v32  ;;  %v392_v37 = vmul.f32 %v653_v18, %v381_v33 }
 0x2af   :  { %v404_v38 = vadd.f32 %v654_v22, %v393_v35 }
 0x2b0   :  { %742 = vmatprep.mubr.bf16.mxu1 %v405_v36  ;;  %v403_v39 = vadd.f32 %v654_v22, %v392_v37 }
 0x2b2   :  { %v406_v40 = vpack.c.bf16 %v404_v38, %v403_v39 }
 0x2b4   :  { %743 = vmatmul.mubr.bf16.vlgmr.msra.gmra.mrb[4].mxu1 %v406_v40 }
 0x2b5   :  { %754 = vmatprep.mubr.msk.bf16.mxu1 %vm922_vm0, %v921_v0 }
 0x387   :  { %v744_v34 = vpop.f32.mrb[4].mxu1 }
 0x388   :  { %v505_v41 = vpop.f32.mrb[5].mxu1 }
 0x389   :  { %v745_v29 = vpop.f32.mrb[6].mxu1 }
 0x38a   :  { %v521_v42 = vpack.c.bf16 %v745_v29, %v744_v34  ;;  %v508_v43 = vpop.f32.mrb[7].mxu1 }
 0x38b   :  { %v520_v44 = vpack.c.bf16 %v508_v43, %v505_v41 }
 0x38c   :  { %753 = vmatpush3.bf16.msra.mxu1 %v521_v42 }
 0x38d   :  { %747 = vmatpush3.bf16.msra.mxu0 %v520_v44 }
 0x38f   :  { %755 = vmatmul.mubr.msk.bf16.vlgmr.msra.gmra.mrb[8].mxu1 %vm105_vm1, %v1053_v4 }
 0x390   :  { %749 = vmatmul.mubr.msk.bf16.vlgmr.msra.gmra.mrb[8].mxu0 %vm105_vm1, %v1051_v3 }
 0x462   :  { %v597_v46 = vpop.f32.mrb[8].mxu1 }
 0x463   :  { %v556_v0 = vpop.f32.mrb[8].mxu0  ;;  %v613_v47 = vadd.f32 %v665_v45, %v597_v46  ;;  %v756_v48 = vpop.f32.mrb[9].mxu1 }
 0x464   :  { %v611_v49 = vadd.f32 %v665_v45, %v556_v0  ;;  %v750_v50 = vpop.f32.mrb[9].mxu0  ;;  %v600_v51 = vpop.f32.mrb[10].mxu1 }
 0x465   :  { %617 = vst [vmem:[#allocation10 + $0x10] sm:$0xff] %v613_v47  ;;  %v559_v52 = vpop.f32.mrb[10].mxu0  ;;  %v614_v53 = vadd.f32 %v665_v45, %v600_v51  ;;  %v757_v4 = vpop.f32.mrb[11].mxu1 }
 0x466   :  { %615 = vst [vmem:[#allocation10] sm:$0xff] %v611_v49  ;;  %v612_v54 = vadd.f32 %v665_v45, %v559_v52  ;;  %v751_v3 = vpop.f32.mrb[11].mxu0 }
 0x467   :  { %618 = vst [vmem:[#allocation10 + $0x18] sm:$0xff] %v614_v53 }
 0x468   :  { %616 = vst [vmem:[#allocation10 + $0x8] sm:$0xff] %v612_v54 }
 0x469   :  { %896 = shalt.err (!%p893_p8)
}
 0x46a   :  { %s897_s16 = scalar_lea.hbm %s1125_s8, 512 }
 0x46b   :  { %p898_p9 = scmp.ne.s32.totalorder %s1125_s8, %s897_s16  ;;  %p901_p10 = scmp.lt.u32.totalorder %s897_s16, %s1125_s8 }
 0x46d   :  { %p903_p11 = pnand %p901_p10, %p898_p9 }
 0x46f   :  { %906 = shalt.err (!%p903_p11)
}
 0x470   :  { %s924_s30 = smov 128   ;;  %s925_s22 = smov 8  }
 0x471   :  { %630 = dma.vmem_to_hbm [thread:$0]  %s625_s13, 512, %s1125_s8, [#allocation4], %s924_s30, %s924_s30, %s925_s22  }
 0x472   :  { %913 = dma.done.wait [#allocation4], 512  }
 0x473   :  { %914 = vsyncadd [#allocation4], 4294966784 }
 0x474   :  { %634 = vsyncpa [#allocation3], 1 }
 0x475   :  { %635 = vsyncpa [#allocation6], 1 }
 0x476   :  { %636 = vsyncpa [#allocation9], 1 }
 0x477   :  { %637 = vsyncpa [#allocation4], 1 }

</bundles_post_ra>
